<compile_context>
chip_gen: v5e
topology: v5e:2x2
jax: 0.10.0
libtpu: 0.0.40
codegen_flags: <defaults>
</compile_context>

<pallas_src>
import jax
import jax.numpy as jnp
from jax.experimental import pallas as pl
from jax.experimental.pallas import tpu as pltpu


# ----------------------------- config ---------------------------------------
class Config:
    vocab_size = 64
    ctx_len = 8
    embed_dim = 32
    embed_dim_ff_dim = 64   # unused at runtime (blocks are identity), kept for fidelity
    num_layers = 2
    num_heads = 4
    drop_rate = 0.1         # dropout == identity (inference / eval semantics)
    qkv_bias = False


EPS = 1e-5


# ----------------------------- Pallas kernel --------------------------------
def gpt_head_kernel(x_ref,        # VMEM (TM, E) f32   pre-gathered token embeddings
                    pos_ref,      # VMEM (S,  E) f32   positional table
                    scale_ref,    # VMEM (1,  E) f32   LayerNorm scale
                    shift_ref,    # VMEM (1,  E) f32   LayerNorm shift
                    w_ref,        # VMEM (E, TN) bf16  head weight (lane-dense padded)
                    o_ref):       # VMEM (TM, TN) f32  logits tile
    tm, e = x_ref.shape
    s = pos_ref.shape[0]

    x = x_ref[...]
    pos = pos_ref[...]
    if tm == s:                                   # static decision
        x = x + pos
    else:
        # Positional broadcast over (TM//S, S, E); TM % S == 0 checked in wrapper.
        x = (x.reshape(tm // s, s, e) + pos[None, :, :]).reshape(tm, e)

    # dropout == identity (eval); transformer blocks == identity (see source:
    # the second TransformerBlock.forward definition overrides the first).

    # LayerNorm (f32 math; biased variance) == PyTorch LayerNorm in module.
    mean = jnp.mean(x, axis=-1, keepdims=True)
    c = x - mean
    var = jnp.mean(c * c, axis=-1, keepdims=True)
    y = c * jax.lax.rsqrt(var + EPS)
    y = y * scale_ref[...] + shift_ref[...]

    # Head projection: bf16 x bf16 -> f32 accumulate on the MXU; lane-dense store.
    o_ref[...] = jnp.dot(y.astype(w_ref.dtype), w_ref[...],
                         preferred_element_type=jnp.float32)


# ----------------------------- wrapper ---------------------------------------
def gpt_forward(token_ids, params, cfg: Config):
    """Full GPTModel forward. token_ids: (B, S) int32 -> logits (B, S, V)."""
    B, S = token_ids.shape
    E, V = cfg.embed_dim, cfg.vocab_size
    assert S <= cfg.ctx_len, "sequence longer than positional table"
    N = B * S

    # Lane-dense padded vocab; one vocab tile at this size.
    # TODO(synk): at real vocab sizes tile TN to 256/512 (v6e/v7x MXU width)
    # and keep a large row chunk resident so the head weight streams once.
    LANES = 128
    VP = pl.cdiv(V, LANES) * LANES
    TN = VP

    # Row tile: collapse the whole problem into one grid step at toy size;
    # at real sizes cap TM and keep >= 2 row tiles so the "parallel" axis can
    # feed a second TensorCore (v7x) -- re-budget VMEM there (64 MiB/TC).
    TM = N if N <= 256 else 256
    assert N % TM == 0 and TM % 8 == 0 and TM % S == 0

    # Token-embedding gather done with a tiny XLA gather (table is V*E*4 = 8 KiB).
    # NOTE: clip silently differs from PyTorch nn.Embedding (which raises on OOB ids).
    ids_flat = jnp.clip(token_ids.reshape(-1), 0, V - 1).astype(jnp.int32)
    x_tok = jnp.take(params["tok_embed"], ids_flat, axis=0)          # (N, E) f32

    pos = params["pos_embed"][:S]                                    # (S, E) f32
    scale = params["ln_scale"].reshape(1, E)
    shift = params["ln_shift"].reshape(1, E)
    # Head weight stored/streamed as bf16, zero-padded to lane-dense VP.
    w_pad = jnp.zeros((E, VP), jnp.bfloat16).at[:, :V].set(
        params["head_w"].astype(jnp.bfloat16))

    grid = (N // TM,)

    cost = pl.CostEstimate(
        flops=2 * N * E * VP,
        transcendentals=0,
        bytes_accessed=(N * E * 4                      # token-embedding rows
                        + (N // TM) * E * VP * 2       # bf16 head weight per row tile
                        + N * VP * 4                   # logits
                        + S * E * 4 + 2 * E * 4))      # pos + LN params

    grid_spec = pltpu.PrefetchScalarGridSpec(
        num_scalar_prefetch=0,
        grid=grid,
        in_specs=[
            pl.BlockSpec((TM, E), lambda i: (i, 0)),   # token embeddings (row tile)
            pl.BlockSpec((S, E), lambda i: (0, 0)),    # pos table
            pl.BlockSpec((1, E), lambda i: (0, 0)),    # LN scale
            pl.BlockSpec((1, E), lambda i: (0, 0)),    # LN shift
            pl.BlockSpec((E, TN), lambda i: (0, 0)),   # head weight (constant block)
        ],
        out_specs=pl.BlockSpec((TM, TN), lambda i: (i, 0)),
    )

    logits_p = pl.pallas_call(
        gpt_head_kernel,
        out_shape=jax.ShapeDtypeStruct((N, VP), jnp.float32),
        grid_spec=grid_spec,
        compiler_params=pltpu.CompilerParams(
            dimension_semantics=("parallel",)),        # row tiles are independent
        cost_estimate=cost,
    )(x_tok, pos, scale, shift, w_pad)

    return logits_p.reshape(B, S, VP)[:, :, :V]


# ----------------------------- parameter init -------------------------------
def init_params(key, cfg: Config):
    k_tok, k_pos, k_head = jax.random.split(key, 3)
    return {
        "tok_embed": jax.random.normal(k_tok, (cfg.vocab_size, cfg.embed_dim),
                                       dtype=jnp.float32) * 0.02,
        "pos_embed": jax.random.normal(k_pos, (cfg.ctx_len, cfg.embed_dim),
                                       dtype=jnp.float32) * 0.02,
        "ln_scale": jnp.ones((cfg.embed_dim,), jnp.float32),
        "ln_shift": jnp.zeros((cfg.embed_dim,), jnp.float32),
        "head_w": jax.random.normal(k_head, (cfg.embed_dim, cfg.vocab_size),
                                    dtype=jnp.float32) * 0.02,
        # TODO(synk): per-block attention/FF params intentionally omitted --
        # TransformerBlock.forward (as written) is `return x`, so they never
        # affect the output.
    }


# ----------------------------- reference ------------------------------------
def gpt_forward_ref(token_ids, params, cfg: Config):
    B, S = token_ids.shape
    tok = jnp.take(params["tok_embed"], token_ids, axis=0)          # (B,S,E)
    pos = params["pos_embed"][:S][None, :, :]                       # (1,S,E)
    x = tok + pos                                                   # dropout=id, blocks=id
    mean = jnp.mean(x, axis=-1, keepdims=True)
    var = jnp.mean((x - mean) ** 2, axis=-1, keepdims=True)
    x = (x - mean) / jnp.sqrt(var + EPS)
    x = x * params["ln_scale"] + params["ln_shift"]
    return jnp.einsum("bse,ev->bsv", x, params["head_w"])


# ----------------------------- main ------------------------------------------
if __name__ == "__main__":
    cfg = Config()
    key = jax.random.PRNGKey(0)
    k_params, k_tokens = jax.random.split(key)

    params = init_params(k_params, cfg)
    B, S = 2, cfg.ctx_len  # batch=2, seq=8
    token_ids = jax.random.randint(k_tokens, (B, S), 0, cfg.vocab_size,
                                   dtype=jnp.int32)

    logits = gpt_forward(token_ids, params, cfg)
    logits = jax.block_until_ready(logits)

    ref = gpt_forward_ref(token_ids, params, cfg)
    assert logits.shape == (B, S, cfg.vocab_size)
    # bf16 matmul operands (f32 accumulate) -> tolerance loosened vs pure f32.
    assert jnp.allclose(logits, ref, atol=2e-2, rtol=2e-2), "mismatch vs reference"

    print("KERNEL_OK")
</pallas_src>

<mosaic_0001>
module attributes {stable_mosaic.version = 11 : i64} {
  func.func @gpt_head_kernel(%arg0: i32, %arg1: memref<16x32xf32, #tpu.memory_space<vmem>>, %arg2: memref<8x32xf32, #tpu.memory_space<vmem>>, %arg3: memref<1x32xf32, #tpu.memory_space<vmem>>, %arg4: memref<1x32xf32, #tpu.memory_space<vmem>>, %arg5: memref<32x128xbf16, #tpu.memory_space<vmem>>, %arg6: memref<16x128xf32, #tpu.memory_space<vmem>>) attributes {dimension_semantics = [#tpu.dimension_semantics<parallel>], iteration_bounds = array<i64: 1>, scalar_prefetch = 0 : i64, scratch_operands = 0 : i64, tpu.core_type = #tpu.core_type<tc>, window_params = [{transform_indices = @transform_0, window_bounds = array<i64: 16, 32>}, {pipeline_mode = #tpu.pipeline_mode<synchronous>, transform_indices = @transform_1, window_bounds = array<i64: 8, 32>}, {pipeline_mode = #tpu.pipeline_mode<synchronous>, transform_indices = @transform_2, window_bounds = array<i64: 1, 32>}, {pipeline_mode = #tpu.pipeline_mode<synchronous>, transform_indices = @transform_3, window_bounds = array<i64: 1, 32>}, {pipeline_mode = #tpu.pipeline_mode<synchronous>, transform_indices = @transform_4, window_bounds = array<i64: 32, 128>}, {transform_indices = @transform_5, window_bounds = array<i64: 16, 128>}]} {
    %c0 = arith.constant 0 : index
    %c0_0 = arith.constant 0 : index
    %0 = vector.load %arg1[%c0, %c0_0] : memref<16x32xf32, #tpu.memory_space<vmem>>, vector<16x32xf32>
    %c0_1 = arith.constant 0 : index
    %c0_2 = arith.constant 0 : index
    %1 = vector.load %arg2[%c0_1, %c0_2] : memref<8x32xf32, #tpu.memory_space<vmem>>, vector<8x32xf32>
    %2 = vector.shape_cast %0 : vector<16x32xf32> to vector<2x8x32xf32>
    %3 = vector.shape_cast %1 : vector<8x32xf32> to vector<1x8x32xf32>
    %4 = vector.broadcast %3 : vector<1x8x32xf32> to vector<2x8x32xf32>
    %5 = arith.addf %2, %4 : vector<2x8x32xf32>
    %6 = vector.shape_cast %5 : vector<2x8x32xf32> to vector<16x32xf32>
    %cst = arith.constant dense<0.000000e+00> : vector<16xf32>
    %7 = vector.multi_reduction <add>, %6, %cst [1] : vector<16x32xf32> to vector<16xf32>
    %8 = vector.shape_cast %7 : vector<16xf32> to vector<16x1xf32>
    %cst_3 = arith.constant 3.200000e+01 : f32
    %9 = vector.broadcast %cst_3 : f32 to vector<16x1xf32>
    %10 = arith.divf %8, %9 : vector<16x1xf32>
    %11 = vector.broadcast %10 : vector<16x1xf32> to vector<16x32xf32>
    %12 = arith.subf %6, %11 : vector<16x32xf32>
    %13 = arith.mulf %12, %12 : vector<16x32xf32>
    %cst_4 = arith.constant dense<0.000000e+00> : vector<16xf32>
    %14 = vector.multi_reduction <add>, %13, %cst_4 [1] : vector<16x32xf32> to vector<16xf32>
    %15 = vector.shape_cast %14 : vector<16xf32> to vector<16x1xf32>
    %cst_5 = arith.constant 3.200000e+01 : f32
    %16 = vector.broadcast %cst_5 : f32 to vector<16x1xf32>
    %17 = arith.divf %15, %16 : vector<16x1xf32>
    %cst_6 = arith.constant 9.99999974E-6 : f32
    %18 = vector.broadcast %cst_6 : f32 to vector<16x1xf32>
    %19 = arith.addf %17, %18 : vector<16x1xf32>
    %20 = math.rsqrt %19 : vector<16x1xf32>
    %21 = vector.broadcast %20 : vector<16x1xf32> to vector<16x32xf32>
    %22 = arith.mulf %12, %21 : vector<16x32xf32>
    %c0_7 = arith.constant 0 : index
    %c0_8 = arith.constant 0 : index
    %23 = vector.load %arg3[%c0_7, %c0_8] : memref<1x32xf32, #tpu.memory_space<vmem>>, vector<1x32xf32>
    %24 = vector.broadcast %23 : vector<1x32xf32> to vector<16x32xf32>
    %25 = arith.mulf %22, %24 : vector<16x32xf32>
    %c0_9 = arith.constant 0 : index
    %c0_10 = arith.constant 0 : index
    %26 = vector.load %arg4[%c0_9, %c0_10] : memref<1x32xf32, #tpu.memory_space<vmem>>, vector<1x32xf32>
    %27 = vector.broadcast %26 : vector<1x32xf32> to vector<16x32xf32>
    %28 = arith.addf %25, %27 : vector<16x32xf32>
    %29 = arith.truncf %28 : vector<16x32xf32> to vector<16x32xbf16>
    %c0_11 = arith.constant 0 : index
    %c0_12 = arith.constant 0 : index
    %30 = vector.load %arg5[%c0_11, %c0_12] : memref<32x128xbf16, #tpu.memory_space<vmem>>, vector<32x128xbf16>
    %cst_13 = arith.constant dense<0.000000e+00> : vector<16x128xf32>
    %31 = tpu.matmul %29, %30, %cst_13 {dimension_numbers = #tpu.dot_dimension_numbers<[1], [0], [0], [1], [0, 0, 1, 1], [], []>} : vector<16x32xbf16>, vector<32x128xbf16>, vector<16x128xf32> -> vector<16x128xf32>
    %c0_14 = arith.constant 0 : index
    %c0_15 = arith.constant 0 : index
    %32 = vector.load %arg6[%c0_14, %c0_15] : memref<16x128xf32, #tpu.memory_space<vmem>>, vector<16x128xf32>
    tpu.vector_store %arg6[%c0_14, %c0_15], %31 {strides = array<i32>} : memref<16x128xf32, #tpu.memory_space<vmem>>, vector<16x128xf32>,
    return
  }
  func.func @transform_0(%arg0: i32) -> (i32, i32) {
    %c0_i32 = arith.constant 0 : i32
    %c0_i32_0 = arith.constant 0 : i32
    return %arg0, %c0_i32 : i32, i32
  }
  func.func @transform_1(%arg0: i32) -> (i32, i32) {
    %c0_i32 = arith.constant 0 : i32
    %c0_i32_0 = arith.constant 0 : i32
    %c0_i32_1 = arith.constant 0 : i32
    return %c0_i32, %c0_i32_0 : i32, i32
  }
  func.func @transform_2(%arg0: i32) -> (i32, i32) {
    %c0_i32 = arith.constant 0 : i32
    %c0_i32_0 = arith.constant 0 : i32
    %c0_i32_1 = arith.constant 0 : i32
    return %c0_i32, %c0_i32_0 : i32, i32
  }
  func.func @transform_3(%arg0: i32) -> (i32, i32) {
    %c0_i32 = arith.constant 0 : i32
    %c0_i32_0 = arith.constant 0 : i32
    %c0_i32_1 = arith.constant 0 : i32
    return %c0_i32, %c0_i32_0 : i32, i32
  }
  func.func @transform_4(%arg0: i32) -> (i32, i32) {
    %c0_i32 = arith.constant 0 : i32
    %c0_i32_0 = arith.constant 0 : i32
    %c0_i32_1 = arith.constant 0 : i32
    return %c0_i32, %c0_i32_0 : i32, i32
  }
  func.func @transform_5(%arg0: i32) -> (i32, i32) {
    %c0_i32 = arith.constant 0 : i32
    %c0_i32_0 = arith.constant 0 : i32
    return %arg0, %c0_i32 : i32, i32
  }
}

</mosaic_0001>

<bundles_post_ra>
// kernel: tpu_custom_call.1
= control target key start
LH: loop header
LB: loop body
LE: loop exit
PB: predicated region body
PF: predicated region fallthrough
CT: control target
= control target key end

     0   :  { %10 = vsyncpa [#allocation3], 0  ;;  %s390_s0 = inlined_call_operand.hbm [shape: f32[16,32], index: 0, kind: input, shape index: {}]   ;;  %s391_s1 = inlined_call_operand.hbm [shape: f32[8,32], index: 1, kind: input, shape index: {}]   ;;  %s392_s2 = inlined_call_operand.vmem [shape: f32[1,32], index: 2, kind: input, shape index: {}]   ;;  %s393_s3 = inlined_call_operand.vmem [shape: f32[1,32], index: 3, kind: input, shape index: {}]   ;;  %s394_s4 = inlined_call_operand.hbm [shape: bf16[32,128], index: 4, kind: input, shape index: {}]   ;;  %s395_s5 = inlined_call_operand.hbm [shape: f32[16,128], index: 5, kind: output, shape index: {}]  }
   0x1   :  { %11 = vsyncpa [#allocation6], 0  ;;  %s31_s20 = sshll.u32 %s391_s1, 4  ;;  %s32_s20 = int_to_ptr.hbm [resolvable:$true] %s31_s20 }
   0x2   :  { %12 = vsyncpa [#allocation4], 0  ;;  %s322_s21 = smov [#allocation5]   ;;  %s17_s25 = sshll.u32 %s390_s0, 4  ;;  %s18_s25 = int_to_ptr.hbm [resolvable:$true] %s17_s25 }
   0x3   :  { %s33_s22 = sshll.u32 %s322_s21, 4  ;;  %s323_s26 = smov [#allocation2]   ;;  %s34_s22 = int_to_ptr.vmem [resolvable:$true] %s33_s22 }
   0x4   :  { %36 = dma.hbm_to_vmem [thread:$0]  %s32_s20, 128, %s34_s22, [#allocation6]  }
   0x5   :  { %s19_s27 = sshll.u32 %s323_s26, 4  ;;  %s324_s28 = smov 128   ;;  %s20_s27 = int_to_ptr.vmem [resolvable:$true] %s19_s27 }
   0x6   :  { %s325_s29 = smov 8   ;;  %s45_s6 = sshll.u32 %s394_s4, 4  ;;  %s46_s6 = int_to_ptr.hbm [resolvable:$true] %s45_s6 }
   0x7   :  { %25 = dma.hbm_to_vmem [thread:$0]  %s18_s25, 256, %s20_s27, [#allocation3], %s324_s28, %s324_s28, %s325_s29  }
   0x8   :  { %s326_s7 = smov [#allocation7]   ;;  %s327_s0 = smov 64  }
   0x9   :  { %s47_s8 = sshll.u32 %s326_s7, 4  ;;  %s328_s9 = smov 4   ;;  %s48_s8 = int_to_ptr.vmem [resolvable:$true] %s47_s8 }
   0xa   :  { %53 = dma.hbm_to_vmem [thread:$0]  %s46_s6, 256, %s48_s8, [#allocation6], %s327_s0, %s327_s0, %s328_s9  }
   0xb   :  { %316 = dma.done.wait [#allocation3], 256  }
   0xc   :  { %317 = vsyncadd [#allocation3], 4294967040 }
   0xd   :  { %318 = dma.done.wait [#allocation6], 384  }
   0xe   :  { %319 = vsyncadd [#allocation6], 4294966912  ;;  %v67_v0 = vld [vmem:[#allocation2] sm:$0xff]  ;;  %v69_v1 = vld [vmem:[#allocation5] sm:$0xff]  ;;  %vm72_vm0 = vcmask 261120   ;;  %v329_v7 = vmov 32.0  }
   0xf   :  { %v70_v2 = vadd.f32 %v69_v1, %v67_v0  ;;  %v68_v3 = vld [vmem:[#allocation2 + $0x8] sm:$0xff]  ;;  %214 = vrcp.f32 %v329_v7  ;;  %v202_v24 = vld [vmem:[#allocation7 + $0x8] sm:$0xff]  ;;  %v201_v26 = vld [vmem:[#allocation7] sm:$0xff]  ;;  %s330_s13 = smov [#allocation8]   ;;  %s178_s16 = sshll.u32 %s395_s5, 4  ;;  %s179_s16 = int_to_ptr.hbm [resolvable:$true] %s178_s16 }
  0x10   :  { %v71_v5 = vadd.f32 %v69_v1, %v68_v3  ;;  %162 = vmatpush.bf16.msra.mxu0 %v202_v24  ;;  %v212_v45 = vld [vmem:[%s392_s2] ss:$0 sm:$0xff]  ;;  %s176_s2 = sshll.u32 %s330_s13, 4  ;;  %s177_s2 = int_to_ptr.vmem [resolvable:$true] %s176_s2 }
  0x11   :  { %v73_v4 = vsel %vm72_vm0, %v70_v2, 0.0  ;;  %v213_v50 = vld [vmem:[%s393_s3] ss:$0 sm:$0xff] }
  0x12   :  { %74 = vadd.xlane.f32.xlu0 %v73_v4  ;;  %v76_v6 = vsel %vm72_vm0, %v71_v5, 0.0 }
  0x14   :  { %163 = vmatpush.bf16.msra.mxu0 %v201_v26 }
  0x15   :  { %v215_v8 = vpop.eup %214 }
  0x16   :  { %v80_v9 = vmul.f32 32.0, %v215_v8  ;;  %vm84_vm1 = vweird.f32 %v215_v8 }
  0x18   :  { %v81_v10 = vsub.f32 1.0, %v80_v9 }
  0x1a   :  { %77 = vadd.xlane.f32.xlu0 %v76_v6  ;;  %v82_v11 = vmul.f32 %v215_v8, %v81_v10 }
  0x1c   :  { %v83_v12 = vadd.f32 %v215_v8, %v82_v11 }
  0x1e   :  { %v85_v13 = vsel %vm84_vm1, %v215_v8, %v83_v12 }
  0x85   :  { %v75_v14 = vpop.xlane.xlu0 %74 }
  0x86   :  { %v86_v15 = vmul.f32 %v85_v13, %v75_v14 }
  0x88   :  { %v88_v16 = vsub.f32 %v70_v2, %v86_v15 }
  0x8a   :  { %v90_v17 = vmul.f32 %v88_v16, %v88_v16 }
  0x8c   :  { %v92_v18 = vsel %vm72_vm0, %v90_v17, 0.0 }
  0x8d   :  { %93 = vadd.xlane.f32.xlu1 %v92_v18  ;;  %v78_v19 = vpop.xlane.xlu0 %77 }
  0x8e   :  { %v87_v20 = vmul.f32 %v85_v13, %v78_v19 }
  0x90   :  { %v89_v21 = vsub.f32 %v71_v5, %v87_v20 }
  0x92   :  { %v91_v22 = vmul.f32 %v89_v21, %v89_v21 }
  0x94   :  { %v95_v23 = vsel %vm72_vm0, %v91_v22, 0.0 }
  0x95   :  { %96 = vadd.xlane.f32.xlu1 %v95_v23 }
 0x100   :  { %v94_v25 = vpop.xlane.xlu1 %93 }
 0x101   :  { %v98_v27 = vmul.f32 %v94_v25, %v85_v13 }
 0x103   :  { %v100_v28 = vadd.f32 1e-05, %v98_v27 }
 0x105   :  { %216 = vrsqrt.f32 %v100_v28  ;;  %vm108_vm3 = vweird.f32 %v100_v28 }
 0x108   :  { %v97_v29 = vpop.xlane.xlu1 %96 }
 0x109   :  { %v99_v30 = vmul.f32 %v97_v29, %v85_v13 }
 0x10b   :  { %v217_v31 = vpop.eup %216  ;;  %v101_v32 = vadd.f32 1e-05, %v99_v30 }
 0x10c   :  { %v103_v33 = vmul.f32 %v217_v31, %v100_v28  ;;  %vm109_vm2 = vweird.f32 %v217_v31 }
 0x10d   :  { %218 = vrsqrt.f32 %v101_v32  ;;  %vm110_vm4 = vmor %vm108_vm3, %vm109_vm2  ;;  %vm118_vm6 = vweird.f32 %v101_v32 }
 0x10e   :  { %v104_v34 = vmul.f32 %v217_v31, %v103_v33 }
 0x110   :  { %v105_v35 = vmul.f32 0.5, %v104_v34 }
 0x112   :  { %v106_v36 = vsub.f32 1.5, %v105_v35 }
 0x113   :  { %v219_v37 = vpop.eup %218 }
 0x114   :  { %v107_v38 = vmul.f32 %v217_v31, %v106_v36  ;;  %v113_v39 = vmul.f32 %v219_v37, %v101_v32  ;;  %vm119_vm5 = vweird.f32 %v219_v37 }
 0x115   :  { %vm120_vm7 = vmor %vm118_vm6, %vm119_vm5 }
 0x116   :  { %v114_v40 = vmul.f32 %v219_v37, %v113_v39  ;;  %v111_v41 = vsel %vm110_vm4, %v217_v31, %v107_v38 }
 0x117   :  { %v122_v44 = vmul.f32 %v111_v41, %v88_v16 }
 0x118   :  { %v115_v42 = vmul.f32 0.5, %v114_v40 }
 0x119   :  { %v128_v49 = vmul.f32 %v212_v45, %v122_v44 }
 0x11a   :  { %v116_v43 = vsub.f32 1.5, %v115_v42 }
 0x11b   :  { %v134_v52 = vadd.f32 %v213_v50, %v128_v49 }
 0x11c   :  { %v117_v46 = vmul.f32 %v219_v37, %v116_v43 }
 0x11e   :  { %v121_v47 = vsel %vm120_vm7, %v219_v37, %v117_v46 }
 0x11f   :  { %v123_v48 = vmul.f32 %v121_v47, %v89_v21 }
 0x121   :  { %v129_v51 = vmul.f32 %v212_v45, %v123_v48 }
 0x123   :  { %v135_v53 = vadd.f32 %v213_v50, %v129_v51 }
 0x125   :  { %v136_v54 = vpack.c.bf16 %v135_v53, %v134_v52 }
 0x127   :  { %200 = vmatmul.msk.bf16.vlgmr.msra.gmra.mxu0 %vm72_vm0, %v136_v54 }
 0x1a4   :  { %v165_v55 = vpop.f32.mrf.mxu0 }
 0x1a5   :  { %170 = vst [vmem:[#allocation8] sm:$0xff] %v165_v55 }
 0x1ac   :  { %v167_v56 = vpop.f32.mrf.mxu0 }
 0x1ad   :  { %171 = vst [vmem:[#allocation8 + $0x8] sm:$0xff] %v167_v56 }
 0x1ae   :  { %184 = dma.vmem_to_hbm [thread:$0]  %s177_s2, 256, %s179_s16, [#allocation4], %s324_s28, %s324_s28, %s325_s29  }
 0x1af   :  { %320 = dma.done.wait [#allocation4], 256  }
 0x1b0   :  { %321 = vsyncadd [#allocation4], 4294967040 }
 0x1b1   :  { %189 = vsyncpa [#allocation3], 1 }
 0x1b2   :  { %190 = vsyncpa [#allocation6], 1 }
 0x1b3   :  { %191 = vsyncpa [#allocation4], 1 }

</bundles_post_ra>
